<compile_context>
chip_gen: v7x
topology: tpu7x:2x2x1
jax: 0.10.0
libtpu: 0.0.40
codegen_flags: <defaults>
</compile_context>

<pallas_src>
import math

import jax
import jax.numpy as jnp
from jax.experimental import pallas as pl
from jax.experimental.pallas import tpu as pltpu


def _round_up(x, m):
    return (x + m - 1) // m * m


def _divisor_tile(n, requested, multiple, max_cap=None):
    """Largest d <= min(requested, max_cap, n) with d % multiple == 0 and n % d == 0.

    `n` is always a multiple of 128 (hence of `multiple`), so a valid divisor
    always exists.  Keeps tiles lane/sublane aligned and avoids lcm padding.
    """
    cap = min(requested, n)
    if max_cap is not None:
        cap = min(cap, max_cap)
    cap = max(cap, multiple)
    best = multiple
    d = multiple
    while d <= cap:
        if n % d == 0:
            best = d
        d += multiple
    return best


def _dense_sage_kernel(adj_ref, featk_ref, feats_ref, wT_ref, b_ref,
                       out_ref, acc_ref):
    # adj_ref  : (tile_n, tile_k)      bf16  adjacency tile (dst rows, src cols)
    # featk_ref: (tile_k, Din+1)       bf16  [src features | 1] for this K tile
    # feats_ref: (tile_n, Din+1)       bf16  [self features | 1] for this row block
    # wT_ref   : (Din+1, Dout_pad)     f32   W^T with an appended zero row
    # b_ref    : (1, Dout_pad)         f32   bias
    # out_ref  : (tile_n, Dout_pad)
    # acc_ref  : (tile_n, Din+1)       f32   running [adj @ feat | in_degree]
    k = pl.program_id(1)

    @pl.when(k == 0)
    def _init():
        acc_ref[...] = jnp.zeros_like(acc_ref)

    # bf16 x bf16 -> f32 on the MXU.  The ones column of feat_aug makes the
    # last accumulator column the exact in-degree (0/1 adj * 1, f32 accumulate).
    acc_ref[...] += jnp.dot(adj_ref[...], featk_ref[...],
                            preferred_element_type=jnp.float32)

    @pl.when(k == pl.num_programs(1) - 1)
    def _finalize():
        d_aug = acc_ref.shape[1]                  # Din + 1 (static)
        # [adj@feat + feat | in_deg + 1]  (ones column of the self features
        # turns the degree column directly into the denominator).
        h_full = acc_ref[...] + feats_ref[...].astype(jnp.float32)
        denom = h_full[:, d_aug - 1:d_aug]        # exact integer-valued f32
        h_aug = h_full / denom                    # exact divide; finalize-only
        # Last row of wT_ref is zero, so the (now all-ones) extra column of
        # h_aug contributes nothing to the projection.
        rst = jnp.dot(h_aug, wT_ref[...], preferred_element_type=jnp.float32)
        out_ref[...] = (rst + b_ref[...]).astype(out_ref.dtype)


def dense_sage_conv(adj, feat, weight, bias, *, tile_n=512, tile_k=1024,
                    vmem_limit_bytes=None):
    """Pallas DenseSAGEConv forward.

    adj   : (N, N)       0/1 adjacency.  Pass it as bf16 to avoid any
                         wrapper-side O(N^2) cast (0/1 is exact in bf16).
    feat  : (N, Din)
    weight: (Dout, Din)  (torch.nn.Linear layout)
    bias  : (Dout,)
    returns (N, Dout) with feat.dtype
    """
    N, Din = feat.shape
    Dout = weight.shape[0]
    assert adj.shape == (N, N)
    out_dtype = feat.dtype
    d_aug = Din + 1                                  # features + ones column

    # Lane-dense output: pad Dout up to a multiple of 128, strip afterwards.
    dout_pad = _round_up(Dout, 128)

    # Pad N only to 128 alignment; tiles are chosen as divisors of n_align so
    # no further padding is ever needed.  tile_n capped at n_align // 2 (when
    # possible) so grid[0] >= 2 for v7x's two TensorCores.
    n_pad = _round_up(N, 128)
    cap_n = n_pad // 2 if n_pad >= 256 else n_pad
    tile_n = _divisor_tile(n_pad, tile_n, 16, max_cap=cap_n)   # bf16 sublane align
    tile_k = _divisor_tile(n_pad, tile_k, 128)                 # lane align

    # adj streams as bf16 (exact for 0/1).  Cast/pad only if actually needed.
    adj_p = adj if adj.dtype == jnp.bfloat16 else adj.astype(jnp.bfloat16)
    if n_pad != N:
        adj_p = jnp.zeros((n_pad, n_pad), jnp.bfloat16).at[:N, :N].set(adj_p)

    # feat_aug = [feat | 1] in bf16 (tiny N x Din cast; halves feat HBM bytes
    # and gives a native-rate bf16 x bf16 MXU aggregation).
    feat_bf = feat.astype(jnp.bfloat16)
    if n_pad != N:
        feat_bf = jnp.zeros((n_pad, Din), jnp.bfloat16).at[:N, :].set(feat_bf)
    feat_aug = jnp.concatenate(
        [feat_bf, jnp.ones((n_pad, 1), jnp.bfloat16)], axis=1)   # (n_pad, Din+1)

    # One-time wrapper-side transpose + zero row (for the ones column) +
    # output-channel padding.  Kept f32: finalize-only, accuracy-preserving.
    wT = weight.astype(jnp.float32).T                            # (Din, Dout)
    wT_p = jnp.zeros((d_aug, dout_pad), jnp.float32).at[:Din, :Dout].set(wT)
    b_p = jnp.zeros((1, dout_pad), jnp.float32).at[:, :Dout].set(
        bias.astype(jnp.float32).reshape(1, Dout))

    grid = (n_pad // tile_n, n_pad // tile_k)

    # VMEM budget from the actual (double-buffered) footprint, not a blanket
    # number; capped at 64 MiB so the same tiles stay within v7x's VMEM.
    out_isize = jnp.dtype(out_dtype).itemsize
    footprint = (
        2 * tile_n * tile_k * 2          # adj tiles (bf16, double-buffered)
        + 2 * tile_k * d_aug * 2         # feat_aug K tiles
        + 2 * tile_n * d_aug * 2         # feat_aug self tiles
        + 2 * d_aug * dout_pad * 4       # W^T
        + 2 * dout_pad * 4               # bias
        + 2 * tile_n * dout_pad * out_isize  # output tiles
        + tile_n * d_aug * 4             # accumulator scratch
    )
    if vmem_limit_bytes is None:
        vmem_limit_bytes = min(max(int(1.5 * footprint) + (4 << 20), 16 << 20),
                               64 << 20)

    out = pl.pallas_call(
        _dense_sage_kernel,
        out_shape=jax.ShapeDtypeStruct((n_pad, dout_pad), out_dtype),
        grid_spec=pltpu.PrefetchScalarGridSpec(
            num_scalar_prefetch=0,
            grid=grid,
            in_specs=[
                pl.BlockSpec((tile_n, tile_k), lambda i, k: (i, k)),   # adj tile
                pl.BlockSpec((tile_k, d_aug), lambda i, k: (k, 0)),    # feat_aug (K)
                pl.BlockSpec((tile_n, d_aug), lambda i, k: (i, 0)),    # feat_aug (self)
                pl.BlockSpec((d_aug, dout_pad), lambda i, k: (0, 0)),  # W^T (+0 row)
                pl.BlockSpec((1, dout_pad), lambda i, k: (0, 0)),      # bias
            ],
            out_specs=pl.BlockSpec((tile_n, dout_pad), lambda i, k: (i, 0)),
            scratch_shapes=[
                pltpu.VMEM((tile_n, d_aug), jnp.float32),  # [agg | degree] accumulator
            ],
        ),
        compiler_params=pltpu.CompilerParams(
            dimension_semantics=("parallel", "arbitrary"),
            vmem_limit_bytes=vmem_limit_bytes,
        ),
    )(adj_p, feat_aug, feat_aug, wT_p, b_p)

    return out[:N, :Dout]


def _reference(adj, feat, weight, bias):
    adj = adj.astype(jnp.float32)
    feat32 = feat.astype(jnp.float32)
    in_deg = adj.sum(axis=1, keepdims=True)
    h_neigh = (adj @ feat32 + feat32) / (in_deg + 1.0)
    return (h_neigh @ weight.T + bias).astype(feat.dtype)


if __name__ == "__main__":
    key = jax.random.PRNGKey(0)
    k_adj, k_feat, k_w, k_b = jax.random.split(key, 4)

    N = 256          # number of nodes
    in_feats = 32
    out_feats = 64

    # Deterministic synthetic inputs.  adj is produced directly as bf16 (0/1
    # is exact in bf16) so the kernel wrapper does no O(N^2) cast/copy.
    adj = (jax.random.uniform(k_adj, (N, N)) > 0.7).astype(jnp.bfloat16)
    feat = jax.random.normal(k_feat, (N, in_feats), dtype=jnp.float32)

    # Parameter init matching DenseSAGEConv.reset_parameters():
    #   xavier_uniform_(fc.weight, gain=calculate_gain('relu'))
    gain = 2.0 ** 0.5
    bound_w = gain * (6.0 / (in_feats + out_feats)) ** 0.5
    weight = jax.random.uniform(k_w, (out_feats, in_feats),
                                minval=-bound_w, maxval=bound_w,
                                dtype=jnp.float32)
    #   fc.bias: nn.Linear default uniform(-1/sqrt(fan_in), 1/sqrt(fan_in))
    bound_b = 1.0 / (in_feats ** 0.5)
    bias = jax.random.uniform(k_b, (out_feats,),
                              minval=-bound_b, maxval=bound_b,
                              dtype=jnp.float32)

    # TODO(synk): feat_drop (nn.Dropout) is identity at p=0 / eval; activation
    # and norm are None in this configuration; not modeled.
    # tile_n/tile_k set to 128 here so the small demo exercises the K-axis
    # accumulator path (grid = (2, 2)); defaults are larger for real graphs.
    out = dense_sage_conv(adj, feat, weight, bias, tile_n=128, tile_k=128)
    out = jax.block_until_ready(out)

    ref = _reference(adj, feat, weight, bias)
    assert out.shape == (N, out_feats)
    # Tolerance accounts for the bf16 quantization of the streamed features
    # (adjacency 0/1 and the f32 accumulation/divide are exact).
    assert jnp.allclose(out, ref, atol=5e-3, rtol=5e-3)

    print("KERNEL_OK")
</pallas_src>

<mosaic_0001>
module attributes {stable_mosaic.version = 11 : i64} {
  func.func @_dense_sage_kernel(%arg0: i32, %arg1: i32, %arg2: memref<128x128xbf16, #tpu.memory_space<vmem>>, %arg3: memref<128x33xbf16, #tpu.memory_space<vmem>>, %arg4: memref<128x33xbf16, #tpu.memory_space<vmem>>, %arg5: memref<33x128xf32, #tpu.memory_space<vmem>>, %arg6: memref<1x128xf32, #tpu.memory_space<vmem>>, %arg7: memref<128x128xf32, #tpu.memory_space<vmem>>, %arg8: memref<128x33xf32, #tpu.memory_space<vmem>>) attributes {dimension_semantics = [#tpu.dimension_semantics<parallel>, #tpu.dimension_semantics<arbitrary>], iteration_bounds = array<i64: 2, 2>, scalar_prefetch = 0 : i64, scratch_operands = 1 : i64, tpu.core_type = #tpu.core_type<tc>, window_params = [{transform_indices = @transform_0, window_bounds = array<i64: 128, 128>}, {transform_indices = @transform_1, window_bounds = array<i64: 128, 33>}, {transform_indices = @transform_2, window_bounds = array<i64: 128, 33>}, {pipeline_mode = #tpu.pipeline_mode<synchronous>, transform_indices = @transform_3, window_bounds = array<i64: 33, 128>}, {pipeline_mode = #tpu.pipeline_mode<synchronous>, transform_indices = @transform_4, window_bounds = array<i64: 1, 128>}, {transform_indices = @transform_5, window_bounds = array<i64: 128, 128>}]} {
    %c0_i32 = arith.constant 0 : i32
    %0 = arith.cmpi eq, %arg1, %c0_i32 : i32
    %1 = arith.extui %0 : i1 to i32
    %c0_i32_0 = arith.constant 0 : i32
    %2 = arith.cmpi ne, %1, %c0_i32_0 : i32
    scf.if %2 {
      %cst_9 = arith.constant 0.000000e+00 : f32
      %12 = vector.broadcast %cst_9 : f32 to vector<128x33xf32>
      %c0_10 = arith.constant 0 : index
      %c0_11 = arith.constant 0 : index
      %13 = vector.load %arg8[%c0_10, %c0_11] : memref<128x33xf32, #tpu.memory_space<vmem>>, vector<128x33xf32>
      tpu.vector_store %arg8[%c0_10, %c0_11], %12 {strides = array<i32>} : memref<128x33xf32, #tpu.memory_space<vmem>>, vector<128x33xf32>,
    } else {
    }
    %c0 = arith.constant 0 : index
    %c0_1 = arith.constant 0 : index
    %3 = vector.load %arg8[%c0, %c0_1] : memref<128x33xf32, #tpu.memory_space<vmem>>, vector<128x33xf32>
    %c0_2 = arith.constant 0 : index
    %c0_3 = arith.constant 0 : index
    %4 = vector.load %arg2[%c0_2, %c0_3] : memref<128x128xbf16, #tpu.memory_space<vmem>>, vector<128x128xbf16>
    %c0_4 = arith.constant 0 : index
    %c0_5 = arith.constant 0 : index
    %5 = vector.load %arg3[%c0_4, %c0_5] : memref<128x33xbf16, #tpu.memory_space<vmem>>, vector<128x33xbf16>
    %cst = arith.constant dense<0.000000e+00> : vector<128x33xf32>
    %6 = tpu.matmul %4, %5, %cst {dimension_numbers = #tpu.dot_dimension_numbers<[1], [0], [0], [1], [0, 0, 1, 1], [], []>} : vector<128x128xbf16>, vector<128x33xbf16>, vector<128x33xf32> -> vector<128x33xf32>
    %7 = arith.addf %3, %6 : vector<128x33xf32>
    %c0_6 = arith.constant 0 : index
    %c0_7 = arith.constant 0 : index
    %8 = vector.load %arg8[%c0_6, %c0_7] : memref<128x33xf32, #tpu.memory_space<vmem>>, vector<128x33xf32>
    tpu.vector_store %arg8[%c0_6, %c0_7], %7 {strides = array<i32>} : memref<128x33xf32, #tpu.memory_space<vmem>>, vector<128x33xf32>,
    %c1_i32 = arith.constant 1 : i32
    %9 = arith.cmpi eq, %arg1, %c1_i32 : i32
    %10 = arith.extui %9 : i1 to i32
    %c0_i32_8 = arith.constant 0 : i32
    %11 = arith.cmpi ne, %10, %c0_i32_8 : i32
    scf.if %11 {
      %c0_9 = arith.constant 0 : index
      %c0_10 = arith.constant 0 : index
      %12 = vector.load %arg8[%c0_9, %c0_10] : memref<128x33xf32, #tpu.memory_space<vmem>>, vector<128x33xf32>
      %c0_11 = arith.constant 0 : index
      %c0_12 = arith.constant 0 : index
      %13 = vector.load %arg4[%c0_11, %c0_12] : memref<128x33xbf16, #tpu.memory_space<vmem>>, vector<128x33xbf16>
      %14 = arith.extf %13 : vector<128x33xbf16> to vector<128x33xf32>
      %15 = arith.addf %12, %14 : vector<128x33xf32>
      %16 = vector.extract_strided_slice %15 {offsets = [0, 32], sizes = [128, 1], strides = [1, 1]} : vector<128x33xf32> to vector<128x1xf32>
      %17 = vector.broadcast %16 : vector<128x1xf32> to vector<128x33xf32>
      %18 = arith.divf %15, %17 : vector<128x33xf32>
      %c0_13 = arith.constant 0 : index
      %c0_14 = arith.constant 0 : index
      %19 = vector.load %arg5[%c0_13, %c0_14] : memref<33x128xf32, #tpu.memory_space<vmem>>, vector<33x128xf32>
      %cst_15 = arith.constant dense<0.000000e+00> : vector<128x128xf32>
      %20 = tpu.matmul %18, %19, %cst_15 {dimension_numbers = #tpu.dot_dimension_numbers<[1], [0], [0], [1], [0, 0, 1, 1], [], []>} : vector<128x33xf32>, vector<33x128xf32>, vector<128x128xf32> -> vector<128x128xf32>
      %c0_16 = arith.constant 0 : index
      %c0_17 = arith.constant 0 : index
      %21 = vector.load %arg6[%c0_16, %c0_17] : memref<1x128xf32, #tpu.memory_space<vmem>>, vector<1x128xf32>
      %22 = vector.broadcast %21 : vector<1x128xf32> to vector<128x128xf32>
      %23 = arith.addf %20, %22 : vector<128x128xf32>
      %c0_18 = arith.constant 0 : index
      %c0_19 = arith.constant 0 : index
      %24 = vector.load %arg7[%c0_18, %c0_19] : memref<128x128xf32, #tpu.memory_space<vmem>>, vector<128x128xf32>
      tpu.vector_store %arg7[%c0_18, %c0_19], %23 {strides = array<i32>} : memref<128x128xf32, #tpu.memory_space<vmem>>, vector<128x128xf32>,
    } else {
    }
    return
  }
  func.func @transform_0(%arg0: i32, %arg1: i32) -> (i32, i32) {
    %c0_i32 = arith.constant 0 : i32
    return %arg0, %arg1 : i32, i32
  }
  func.func @transform_1(%arg0: i32, %arg1: i32) -> (i32, i32) {
    %c0_i32 = arith.constant 0 : i32
    %c0_i32_0 = arith.constant 0 : i32
    return %arg1, %c0_i32 : i32, i32
  }
  func.func @transform_2(%arg0: i32, %arg1: i32) -> (i32, i32) {
    %c0_i32 = arith.constant 0 : i32
    %c0_i32_0 = arith.constant 0 : i32
    return %arg0, %c0_i32 : i32, i32
  }
  func.func @transform_3(%arg0: i32, %arg1: i32) -> (i32, i32) {
    %c0_i32 = arith.constant 0 : i32
    %c0_i32_0 = arith.constant 0 : i32
    %c0_i32_1 = arith.constant 0 : i32
    return %c0_i32, %c0_i32_0 : i32, i32
  }
  func.func @transform_4(%arg0: i32, %arg1: i32) -> (i32, i32) {
    %c0_i32 = arith.constant 0 : i32
    %c0_i32_0 = arith.constant 0 : i32
    %c0_i32_1 = arith.constant 0 : i32
    return %c0_i32, %c0_i32_0 : i32, i32
  }
  func.func @transform_5(%arg0: i32, %arg1: i32) -> (i32, i32) {
    %c0_i32 = arith.constant 0 : i32
    %c0_i32_0 = arith.constant 0 : i32
    return %arg0, %c0_i32 : i32, i32
  }
}

</mosaic_0001>

<bundles_post_ra>
// kernel: tpu_custom_call.1
= control target key start
LH: loop header
LB: loop body
LE: loop exit
PB: predicated region body
PF: predicated region fallthrough
CT: control target
= control target key end

     0   :  { %s2105_s0 = inlined_call_operand.vmem [shape: bf16[256,256], index: 0, kind: input, shape index: {}]   ;;  %s2106_s1 = inlined_call_operand.vmem [shape: bf16[256,33], index: 1, kind: input, shape index: {}]   ;;  %s2107_s2 = inlined_call_operand.vmem [shape: bf16[256,33], index: 2, kind: input, shape index: {}]   ;;  %s2108_s3 = inlined_call_operand.vmem [shape: f32[33,128], index: 3, kind: input, shape index: {}]   ;;  %s2109_s4 = inlined_call_operand.vmem [shape: f32[1,128], index: 4, kind: input, shape index: {}]   ;;  %s2110_s5 = inlined_call_operand.hbm [shape: f32[256,128], index: 5, kind: output, shape index: {}]  }
   0x1   :  { %2115 = sst [smem:[#allocation10_spill]] %s2105_s0 }
   0x2   :  { %10 = vsyncpa [#allocation5], 0 }
   0x3   :  { %12 = vsyncpa [#allocation5 + $0x1], 0  ;;  %s1725_s18 = smov 0   ;;  %s1727_s19 = smov 0  }
   0x4   :  { %s1729_s20 = smov 0   ;;  %s1731_s21 = smov 0  }
   0x5   :  { %s1733_s22 = smov 0   ;;  %s1735_s23 = smov 0  }
   0x6   :  { %s1737_s24 = smov 0   ;;  %s1739_s25 = smov 0  }
   0x7   :  { %s1741_s26 = smov 0   ;;  %s1743_s27 = smov 0  }
   0x8 LB: > { %2116 = sst [smem:[#allocation7_spill]] %s1684_s26  ;;  %s1207_s28 = sadd.s32 4294967295, %s1688_s27   ;;  %s1688_s27 = sphi %s1743_s27, %s18_s27   ;;  %s1684_s26 = sphi %s1741_s26, %s2126_s26   ;;  %s1680_s25 = sphi %s1739_s25, %s2133_s25   ;;  %s1676_s24 = sphi %s1737_s24, %s2124_s24   ;;  %s1672_s23 = sphi %s1735_s23, %s2132_s23   ;;  %s1668_s22 = sphi %s1733_s22, %s2131_s22   ;;  %s1664_s21 = sphi %s1731_s21, %s2130_s21   ;;  %s1660_s20 = sphi %s1729_s20, %s2129_s20   ;;  %s1656_s19 = sphi %s1727_s19, %s2128_s19   ;;  %s1652_s18 = sphi %s1725_s18, %s2127_s18  }
   0x9   : > { %s1208_s29 = sadd.s32 4294967294, %s1688_s27   ;;  %s27_s30 = sadd.s32 1, %s1680_s25 }
   0xa   : > { %s30_s6 = sadd.s32 1, %s1684_s26  ;;  %p28_p0 = scmp.ge.s32.totalorder %s27_s30, 2 }
   0xb   : > { %s39_s7 = sadd.s32 1, %s1668_s22  ;;  %p46_p1 = scmp.ne.s32.totalorder %s1668_s22, %s1664_s21 }
   0xc   : > { %p47_p2 = scmp.eq.s32.totalorder %s1688_s27, 0  ;;  %s2135_s30 = smov (%p28_p0, %s27_s30), 0 }
   0xd   : > { %2117 = sst [smem:[#allocation8_spill]] %s2135_s30  ;;  %s2137_s6 = smov (!%p28_p0, %s30_s6), %s1684_s26 }
   0xe   : > { %s35_s8 = ssub.s32 %s1680_s25, %s2135_s30  ;;  %p1788_p3 = por %p47_p2, %p46_p1 }
   0xf   : > { %p32_p4 = scmp.ge.s32.totalorder %s2137_s6, 2  ;;  %s159_s10 = sadd.s32 1, %s1660_s20 }
  0x10   : > { %p169_p5 = scmp.ne.s32.totalorder %s1660_s20, %s1656_s19  ;;  %p170_p6 = scmp.eq.s32.totalorder %s1207_s28, 3 }
  0x11   : > { %s2139_s6 = smov (%p32_p4, %s2137_s6), 0  ;;  %p175_p8 = scmp.ne.s32.totalorder %s1656_s19, %s1652_s18 }
  0x12   : > { %2119 = sst [smem:[#allocation9_spill]] %s2139_s6  ;;  %p1797_p7 = por %p170_p6, %p169_p5 }
  0x13   : > { %s34_s12 = ssub.s32 %s1684_s26, %s2139_s6  ;;  %p176_p9 = scmp.eq.s32.totalorder %s1208_s29, 3 }
  0x14   : > { %s36_s13 = sor.u32 %s35_s8, %s34_s12  ;;  %p157_p10 = scmp.eq.s32.totalorder %s34_s12, 0 }
  0x15   : > { %p37_p11 = scmp.eq.s32.totalorder %s36_s13, 0  ;;  %p1805_p12 = por %p176_p9, %p175_p8 }
  0x16   : > { %s1810_s15 = scalar_select %p157_p10, %s1660_s20, %s159_s10  }
  0x17   : > { %s1813_s16 = scalar_select %p37_p11, %s1668_s22, %s39_s7  }
  0x18   : > { %p1210_p13 = scmp.ge.s32.totalorder %s1688_s27, 4 }
  0x1a   : > { %198 = sbr.rel (%p1210_p13) target bundleno = 53 (0x35), region = 24 }
  0x21   : > { %201 = sbr.rel (!%p1788_p3) target bundleno = 53 (0x35), region = 28  ;;  %s203_s17 = sand.u32 (%p1788_p3), 1, %s1668_s22  }
  0x22   : > { %s1263_s28 = sshll.u32 (%p1788_p3), %s1684_s26, 5  ;;  %s1211_s29 = sshll.u32 (%p1788_p3), %s203_s17, 6 }
  0x23   : > { %s208_s8 = sadd.s32 (%p1788_p3), %s1680_s25, %s1263_s28  ;;  %s2122_s0 = sld [smem:[#allocation10_spill]] (%p1788_p3) }
  0x24   : > { %s1214_s12 = sshll.u32 (%p1788_p3), %s208_s8, 2  ;;  %s205_s7 = scalar_lea.vmem (%p1788_p3), [#allocation3], %s1211_s29 }
  0x29   : > { %s1824_s10 = scalar_lea.vmem %s2122_s0, %s1214_s12 }
  0x2a   : > { %v226_v0 = vld [vmem:[%s1824_s10] sm:$0xf]  ;;  %v228_v1 = vld [vmem:[%s1824_s10 + $0x8] sm:$0xf]  ;;  %v230_v2 = vld [vmem:[%s1824_s10 + $0x10] sm:$0xf] }
  0x2b   : > { %227 = vst [vmem:[%s205_s7] sm:$0xf] %v226_v0  ;;  %229 = vst [vmem:[%s205_s7 + $0x4] sm:$0xf] %v228_v1  ;;  %v232_v3 = vld [vmem:[%s1824_s10 + $0x18] sm:$0xf] }
  0x2c   : > { %231 = vst [vmem:[%s205_s7 + $0x8] sm:$0xf] %v230_v2  ;;  %v234_v4 = vld [vmem:[%s1824_s10 + $0x20] sm:$0xf]  ;;  %v236_v5 = vld [vmem:[%s1824_s10 + $0x28] sm:$0xf] }
  0x2d   : > { %233 = vst [vmem:[%s205_s7 + $0xc] sm:$0xf] %v232_v3  ;;  %235 = vst [vmem:[%s205_s7 + $0x10] sm:$0xf] %v234_v4  ;;  %v238_v6 = vld [vmem:[%s1824_s10 + $0x30] sm:$0xf] }
  0x2e   : > { %237 = vst [vmem:[%s205_s7 + $0x14] sm:$0xf] %v236_v5  ;;  %v240_v7 = vld [vmem:[%s1824_s10 + $0x38] sm:$0xf]  ;;  %v242_v8 = vld [vmem:[%s1824_s10 + $0x40] sm:$0xf] }
  0x2f   : > { %239 = vst [vmem:[%s205_s7 + $0x18] sm:$0xf] %v238_v6  ;;  %241 = vst [vmem:[%s205_s7 + $0x1c] sm:$0xf] %v240_v7  ;;  %v244_v9 = vld [vmem:[%s1824_s10 + $0x48] sm:$0xf] }
  0x30   : > { %243 = vst [vmem:[%s205_s7 + $0x20] sm:$0xf] %v242_v8  ;;  %v246_v10 = vld [vmem:[%s1824_s10 + $0x50] sm:$0xf]  ;;  %v248_v11 = vld [vmem:[%s1824_s10 + $0x58] sm:$0xf] }
  0x31   : > { %245 = vst [vmem:[%s205_s7 + $0x24] sm:$0xf] %v244_v9  ;;  %247 = vst [vmem:[%s205_s7 + $0x28] sm:$0xf] %v246_v10  ;;  %v250_v12 = vld [vmem:[%s1824_s10 + $0x60] sm:$0xf] }
  0x32   : > { %249 = vst [vmem:[%s205_s7 + $0x2c] sm:$0xf] %v248_v11  ;;  %v252_v13 = vld [vmem:[%s1824_s10 + $0x68] sm:$0xf]  ;;  %v254_v14 = vld [vmem:[%s1824_s10 + $0x70] sm:$0xf] }
  0x33   : > { %251 = vst [vmem:[%s205_s7 + $0x30] sm:$0xf] %v250_v12  ;;  %253 = vst [vmem:[%s205_s7 + $0x34] sm:$0xf] %v252_v13  ;;  %v256_v15 = vld [vmem:[%s1824_s10 + $0x78] sm:$0xf] }
  0x34   : > { %255 = vst [vmem:[%s205_s7 + $0x38] sm:$0xf] %v254_v14  ;;  %257 = vst [vmem:[%s205_s7 + $0x3c] sm:$0xf] %v256_v15 }
  0x35 PF: > { %p1215_p0 = scmp.ge.s32.totalorder %s1688_s27, 1  ;;  %p329_p1 = scmp.lt.s32.totalorder %s1688_s27, 5 }
  0x37   : > { %p330_p2 = pnand %p1215_p0, %p329_p1 }
  0x38   : > { %s336_s6 = sand.u32 (!%p330_p2), 1, %s1664_s21   ;;  %s2114_s9 = sand.u32 (!%p330_p2), 1, %s1656_s19  }
  0x39   : > { %333 = sbr.rel (%p330_p2) target bundleno = 746 (0x2ea), region = 77  ;;  %s1216_s17 = sshll.u32 (!%p330_p2), %s336_s6, 6 }
  0x3a   : > { %s1217_s28 = sshll.u32 (!%p330_p2), %s2114_s9, 7  ;;  %s1218_s29 = sshll.u32 (!%p330_p2), %s1672_s23, 4 }
  0x3b   : > { %s1220_s8 = sshll.u32 (!%p330_p2), %s1676_s24, 4  ;;  %p375_p3 = scmp.lt.s32.totalorder (!%p330_p2), %s1218_s29, 31 }
  0x3c   : > { %p381_p4 = scmp.lt.s32.totalorder (!%p330_p2), %s1220_s8, 31  ;;  %s1860_s6 = scalar_lea.vmem (!%p330_p2), [#allocation3], %s1216_s17 }
  0x3d   : > { %s1862_s9 = scalar_lea.vmem (!%p330_p2), [#allocation4], %s1217_s28  ;;  %p1222_p5 = scmp.ne.s32.totalorder (!%p330_p2), %s1672_s23, 0 }
  0x40   : > { %s2141_s29 = smov (!%p375_p3, %s1218_s29), 31  ;;  %s2143_s8 = smov (!%p381_p4, %s1220_s8), 31 }
  0x41   : > { %s1219_s12 = sshll.u32 %s2141_s29, 2  ;;  %s1221_s0 = sshll.u32 %s2143_s8, 2  ;;  %vm392_vm0 = vcmask (!%p1222_p5), 269312   ;;  %v1690_v16 = vmov (!%p1222_p5), 0.0  }
  0x42   : > { %s1853_s7 = scalar_lea.vmem %s2106_s1, %s1219_s12  ;;  %s1858_s21 = scalar_lea.vmem %s2107_s2, %s1221_s0  ;;  %393 = vst.msk [vmem:[#allocation2] sm:$0xff] (!%p1222_p5), %vm392_vm0, %v1690_v16  ;;  %394 = vst.msk [vmem:[#allocation2 + $0x8] sm:$0xff] (!%p1222_p5), %vm392_vm0, %v1690_v16 }
  0x43   : > { %391 = sbr.rel (%p1222_p5) target bundleno = 74 (0x4a), region = 85  ;;  %395 = vst.msk [vmem:[#allocation2 + $0x10] sm:$0xff] (!%p1222_p5), %vm392_vm0, %v1690_v16  ;;  %396 = vst.msk [vmem:[#allocation2 + $0x18] sm:$0xff] (!%p1222_p5), %vm392_vm0, %v1690_v16 }
  0x44   : > { %397 = vst.msk [vmem:[#allocation2 + $0x20] sm:$0xff] (!%p1222_p5), %vm392_vm0, %v1690_v16  ;;  %398 = vst.msk [vmem:[#allocation2 + $0x28] sm:$0xff] (!%p1222_p5), %vm392_vm0, %v1690_v16 }
  0x45   : > { %399 = vst.msk [vmem:[#allocation2 + $0x30] sm:$0xff] (!%p1222_p5), %vm392_vm0, %v1690_v16  ;;  %400 = vst.msk [vmem:[#allocation2 + $0x38] sm:$0xff] (!%p1222_p5), %vm392_vm0, %v1690_v16 }
  0x46   : > { %401 = vst.msk [vmem:[#allocation2 + $0x40] sm:$0xff] (!%p1222_p5), %vm392_vm0, %v1690_v16  ;;  %402 = vst.msk [vmem:[#allocation2 + $0x48] sm:$0xff] (!%p1222_p5), %vm392_vm0, %v1690_v16 }
  0x47   : > { %403 = vst.msk [vmem:[#allocation2 + $0x50] sm:$0xff] (!%p1222_p5), %vm392_vm0, %v1690_v16  ;;  %404 = vst.msk [vmem:[#allocation2 + $0x58] sm:$0xff] (!%p1222_p5), %vm392_vm0, %v1690_v16 }
  0x48   : > { %405 = vst.msk [vmem:[#allocation2 + $0x60] sm:$0xff] (!%p1222_p5), %vm392_vm0, %v1690_v16  ;;  %406 = vst.msk [vmem:[#allocation2 + $0x68] sm:$0xff] (!%p1222_p5), %vm392_vm0, %v1690_v16 }
  0x49   : > { %407 = vst.msk [vmem:[#allocation2 + $0x70] sm:$0xff] (!%p1222_p5), %vm392_vm0, %v1690_v16  ;;  %408 = vst.msk [vmem:[#allocation2 + $0x78] sm:$0xff] (!%p1222_p5), %vm392_vm0, %v1690_v16 }
  0x4a PF: > { %v1528_v17 = vld [vmem:[%s1853_s7] sm:$0xff]   ;;  %v1529_v18 = vld [vmem:[%s1853_s7 + $0x8] sm:$0xff]   ;;  %v1530_v19 = vld [vmem:[%s1853_s7 + $0x10] sm:$0xff]   ;;  %vm666_vm1 = vcmask 269312   ;;  %p1239_p6 = scmp.ne.s32.totalorder %s1672_s23, 1 }
  0x4b   : > { %1341 = vmatprep.subr.bf16.mxu0 %v1528_v17  ;;  %1415 = vmatprep.subr.bf16.mxu1 %v1528_v17  ;;  %v1531_v20 = vld [vmem:[%s1853_s7 + $0x18] sm:$0xff]   ;;  %v1536_v21 = vld [vmem:[%s1860_s6] sm:$0xff]   ;;  %v1533_v24 = vld [vmem:[%s1853_s7 + $0x28] sm:$0xff]   ;;  %vm923_vm2 = vcmask (!%p1239_p6), 1040384  }
  0x4c   : > { %1342 = vmatpush3.bf16.msra.mxu0 %v1528_v17  ;;  %1423 = vmatpush3.bf16.msra.mxu1 %v1528_v17  ;;  %v1537_v22 = vld [vmem:[%s1860_s6 + $0x20] sm:$0xff]   ;;  %v1534_v25 = vld [vmem:[%s1853_s7 + $0x30] sm:$0xff]   ;;  %v1535_v26 = vld [vmem:[%s1853_s7 + $0x38] sm:$0xff]  }
  0x4d   : > { %1343 = vmatprep.subr.bf16.mxu0 %v1529_v18  ;;  %1416 = vmatprep.subr.bf16.mxu1 %v1529_v18  ;;  %v1532_v23 = vld [vmem:[%s1853_s7 + $0x20] sm:$0xff]   ;;  %v1538_v27 = vld [vmem:[%s1860_s6 + $0x8] sm:$0xff]   ;;  %v1540_v29 = vld [vmem:[%s1860_s6 + $0x10] sm:$0xff]  }
  0x4e   : > { %1357 = vmatprep.mubr.bf16.mxu0 %v1536_v21  ;;  %1365 = vmatprep.mubr.bf16.mxu1 %v1537_v22  ;;  %v1539_v28 = vld [vmem:[%s1860_s6 + $0x28] sm:$0xff]   ;;  %v1541_v30 = vld [vmem:[%s1860_s6 + $0x30] sm:$0xff]   ;;  %v1542_v31 = vld [vmem:[%s1860_s6 + $0x18] sm:$0xff]  }
  0x4f   : > { %v1543_v32 = vld [vmem:[%s1860_s6 + $0x38] sm:$0xff]   ;;  %v411_v33 = vld [vmem:[#allocation2 + $0x10] sm:$0xff]  ;;  %v409_v35 = vld [vmem:[#allocation2] sm:$0xff] }
  0x50   : > { %1344 = vmatpush3.bf16.msra.mxu0 %v1529_v18  ;;  %1424 = vmatpush3.bf16.msra.mxu1 %v1529_v18  ;;  %v419_v34 = vld [vmem:[#allocation2 + $0x50] sm:$0xff]  ;;  %v417_v36 = vld [vmem:[#allocation2 + $0x40] sm:$0xff]  ;;  %v412_v39 = vld [vmem:[#allocation2 + $0x18] sm:$0xff] }
  0x51   : > { %1345 = vmatprep.subr.bf16.mxu0 %v1530_v19  ;;  %1417 = vmatprep.subr.bf16.mxu1 %v1530_v19  ;;  %v420_v40 = vld [vmem:[#allocation2 + $0x58] sm:$0xff]  ;;  %v410_v45 = vld [vmem:[#allocation2 + $0x8] sm:$0xff]  ;;  %v415_v57 = vld [vmem:[#allocation2 + $0x30] sm:$0xff] }
  0x52   : > { %v418_v46 = vld [vmem:[#allocation2 + $0x48] sm:$0xff]  ;;  %v423_v58 = vld [vmem:[#allocation2 + $0x70] sm:$0xff]  ;;  %v413_v59 = vld [vmem:[#allocation2 + $0x20] sm:$0xff] }
  0x53   : > { %v421_v60 = vld [vmem:[#allocation2 + $0x60] sm:$0xff]  ;;  %v416_v63 = vld [vmem:[#allocation2 + $0x38] sm:$0xff]  ;;  %v414_v5 = vld [vmem:[#allocation2 + $0x28] sm:$0xff] }
  0x54   : > { %1346 = vmatpush3.bf16.msra.mxu0 %v1530_v19  ;;  %1425 = vmatpush3.bf16.msra.mxu1 %v1530_v19  ;;  %v424_v0 = vld [vmem:[#allocation2 + $0x78] sm:$0xff]  ;;  %v422_v6 = vld [vmem:[#allocation2 + $0x68] sm:$0xff]  ;;  %v1266_v18 = vld [vmem:[%s1858_s21] sm:$0xff] (!%p1239_p6)  }
  0x55   : > { %1347 = vmatprep.subr.bf16.mxu0 %v1531_v20  ;;  %1418 = vmatprep.subr.bf16.mxu1 %v1531_v20  ;;  %v1268_v21 = vunpack.c.h.bf16 (!%p1239_p6), %v1266_v18  ;;  %v1267_v22 = vunpack.c.l.bf16 (!%p1239_p6), %v1266_v18 }
  0x58   : > { %1348 = vmatpush3.bf16.msra.mxu0 %v1531_v20  ;;  %1426 = vmatpush3.bf16.msra.mxu1 %v1531_v20  ;;  %v1691_v20 = vmov (!%p1239_p6), 32  }
  0x59   : > { %1349 = vmatprep.subr.bf16.mxu0 %v1532_v23  ;;  %1419 = vmatprep.subr.bf16.mxu1 %v1532_v23 }
  0x5a   : > { %1545 = vset.pattern.permute.xlu1 (!%p1239_p6), %v1691_v20  ;;  %1544 = vset.pattern.permute.xlu0 (!%p1239_p6), %v1691_v20 }
  0x5c   : > { %1350 = vmatpush3.bf16.msra.mxu0 %v1532_v23  ;;  %1427 = vmatpush3.bf16.msra.mxu1 %v1532_v23  ;;  %v1300_v23 = vld [vmem:[%s1858_s21 + $0x20] sm:$0xff] (!%p1239_p6)  }
  0x5d   : > { %1351 = vmatprep.subr.bf16.mxu0 %v1533_v24  ;;  %1420 = vmatprep.subr.bf16.mxu1 %v1533_v24 }
  0x60   : > { %1352 = vmatpush3.bf16.msra.mxu0 %v1533_v24  ;;  %1428 = vmatpush3.bf16.msra.mxu1 %v1533_v24 }
  0x61   : > { %1353 = vmatprep.subr.bf16.mxu0 %v1534_v25  ;;  %1421 = vmatprep.subr.bf16.mxu1 %v1534_v25 }
  0x64   : > { %1354 = vmatpush3.bf16.msra.mxu0 %v1534_v25  ;;  %1429 = vmatpush3.bf16.msra.mxu1 %v1534_v25  ;;  %v1284_v25 = vunpack.c.h.bf16 (!%p1239_p6), %v1300_v23 }
  0x65   : > { %1355 = vmatprep.subr.bf16.mxu0 %v1535_v26  ;;  %1422 = vmatprep.subr.bf16.mxu1 %v1535_v26 }
  0x68   : > { %1356 = vmatpush3.bf16.msra.mxu0 %v1535_v26  ;;  %1430 = vmatpush3.bf16.msra.mxu1 %v1535_v26 }
  0x6b   : > { %1358 = vmatmul.mubr.bf16.vlgmr.msra.gmra.mrb[0].mxu0 %v1538_v27  ;;  %1366 = vmatmul.mubr.bf16.vlgmr.msra.gmra.mrb[0].mxu1 %v1539_v28  ;;  %v1283_v27 = vunpack.c.l.bf16 (!%p1239_p6), %v1300_v23  ;;  %v1301_v28 = vld [vmem:[%s1858_s21 + $0x28] sm:$0xff] (!%p1239_p6)  }
  0x6c   : > { %1361 = vmatprep.mubr.bf16.mxu0 %v1540_v29  ;;  %1369 = vmatprep.mubr.bf16.mxu1 %v1541_v30 }
  0x73   : > { %1362 = vmatmul.mubr.bf16.gmra.mrb[4].mxu0 %v1542_v31  ;;  %1370 = vmatmul.mubr.bf16.gmra.mrb[4].mxu1 %v1543_v32  ;;  %v1297_v31 = vld [vmem:[%s1858_s21 + $0x8] sm:$0xff] (!%p1239_p6)  }
 0x13e   : > { %v1359_v37 = vpop.f32.mrb[0].mxu0  ;;  %v1367_v38 = vpop.f32.mrb[0].mxu1 }
 0x13f   : > { %v652_v41 = vadd.f32 %v1359_v37, %v411_v33  ;;  %v660_v42 = vadd.f32 %v1367_v38, %v419_v34  ;;  %v587_v43 = vpop.f32.mrb[1].mxu0  ;;  %v619_v44 = vpop.f32.mrb[1].mxu1  ;;  %v1287_v34 = vunpack.c.l.bf16 (!%p1239_p6), %v1301_v28  ;;  %v1288_v38 = vunpack.c.h.bf16 (!%p1239_p6), %v1301_v28 }
 0x140   : > { %v650_v47 = vadd.f32 %v587_v43, %v409_v35  ;;  %v658_v48 = vadd.f32 %v619_v44, %v417_v36  ;;  %v1360_v49 = vpop.f32.mrb[2].mxu0  ;;  %v1368_v50 = vpop.f32.mrb[2].mxu1  ;;  %v1271_v35 = vunpack.c.l.bf16 (!%p1239_p6), %v1297_v31  ;;  %v1272_v44 = vunpack.c.h.bf16 (!%p1239_p6), %v1297_v31 }
 0x141   : > { %669 = vst.msk [vmem:[#allocation2 + $0x10] sm:$0xff] %vm666_vm1, %v652_v41  ;;  %677 = vst.msk [vmem:[#allocation2 + $0x50] sm:$0xff] %vm666_vm1, %v660_v42  ;;  %v653_v51 = vadd.f32 %v1360_v49, %v412_v39  ;;  %v661_v52 = vadd.f32 %v1368_v50, %v420_v40  ;;  %v590_v53 = vpop.f32.mrb[3].mxu0  ;;  %v622_v54 = vpop.f32.mrb[3].mxu1  ;;  %v863_v39 = vld [vmem:[%s2108_s3] sm:$0xff] (!%p1239_p6)  ;;  %v864_v40 = vld [vmem:[%s2108_s3 + $0x8] sm:$0xff] (!%p1239_p6) }
 0x142   : > { %667 = vst.msk [vmem:[#allocation2] sm:$0xff] %vm666_vm1, %v650_v47  ;;  %675 = vst.msk [vmem:[#allocation2 + $0x40] sm:$0xff] %vm666_vm1, %v658_v48  ;;  %v651_v55 = vadd.f32 %v590_v53, %v410_v45  ;;  %v659_v56 = vadd.f32 %v622_v54, %v418_v46  ;;  %v1407_v45 = vpack.c.bf16 (!%p1239_p6), %v864_v40, %v863_v39  ;;  %v1302_v47 = vld [vmem:[%s1858_s21 + $0x30] sm:$0xff] (!%p1239_p6)   ;;  %v866_v50 = vld [vmem:[%s2108_s3 + $0x18] sm:$0xff] (!%p1239_p6) }
 0x143   : > { %670 = vst.msk [vmem:[#allocation2 + $0x18] sm:$0xff] %vm666_vm1, %v653_v51  ;;  %678 = vst.msk [vmem:[#allocation2 + $0x58] sm:$0xff] %vm666_vm1, %v661_v52  ;;  %v1298_v48 = vld [vmem:[%s1858_s21 + $0x10] sm:$0xff] (!%p1239_p6)   ;;  %v1291_v54 = vunpack.c.l.bf16 (!%p1239_p6), %v1302_v47 }
 0x144   : > { %668 = vst.msk [vmem:[#allocation2 + $0x8] sm:$0xff] %vm666_vm1, %v651_v55  ;;  %676 = vst.msk [vmem:[#allocation2 + $0x48] sm:$0xff] %vm666_vm1, %v659_v56  ;;  %1408 = vmatprep.subr.bf16.mxu0 (!%p1239_p6), %v1407_v45  ;;  %1431 = vmatprep.subr.bf16.mxu1 (!%p1239_p6), %v1407_v45  ;;  %v865_v49 = vld [vmem:[%s2108_s3 + $0x10] sm:$0xff] (!%p1239_p6)  ;;  %v1275_v55 = vunpack.c.l.bf16 (!%p1239_p6), %v1298_v48 }
 0x145   : > { %1410 = vmatpush3.bf16.msra.mxu0 (!%p1239_p6), %v1407_v45  ;;  %v1411_v51 = vpack.c.bf16 (!%p1239_p6), %v866_v50, %v865_v49  ;;  %1434 = vmatpush3.bf16.msra.mxu1 (!%p1239_p6), %v1407_v45 }
 0x146   : > { %v1363_v61 = vpop.f32.mrb[4].mxu0  ;;  %v1371_v62 = vpop.f32.mrb[4].mxu1  ;;  %686 = sbr.rel (%p1239_p6) target bundleno = 720 (0x2d0), region = 89 }
 0x147   : > { %v656_v1 = vadd.f32 %v1363_v61, %v415_v57  ;;  %v664_v2 = vadd.f32 %v1371_v62, %v423_v58  ;;  %v603_v3 = vpop.f32.mrb[5].mxu0  ;;  %v635_v4 = vpop.f32.mrb[5].mxu1  ;;  %1412 = vmatprep.subr.bf16.mxu0 (!%p1239_p6), %v1411_v51  ;;  %1432 = vmatprep.subr.bf16.mxu1 (!%p1239_p6), %v1411_v51  ;;  %v1292_v58 = vunpack.c.h.bf16 (!%p1239_p6), %v1302_v47  ;;  %v1276_v62 = vunpack.c.h.bf16 (!%p1239_p6), %v1298_v48 }
 0x148   : > { %v654_v7 = vadd.f32 %v603_v3, %v413_v59  ;;  %v662_v8 = vadd.f32 %v635_v4, %v421_v60  ;;  %v1364_v9 = vpop.f32.mrb[6].mxu0  ;;  %v1372_v10 = vpop.f32.mrb[6].mxu1  ;;  %v697_v36 = vld [vmem:[#allocation2 + $0x50] sm:$0xff] (!%p1239_p6) }
 0x149   : > { %673 = vst.msk [vmem:[#allocation2 + $0x30] sm:$0xff] %vm666_vm1, %v656_v1  ;;  %681 = vst.msk [vmem:[#allocation2 + $0x70] sm:$0xff] %vm666_vm1, %v664_v2  ;;  %v657_v11 = vadd.f32 %v1364_v9, %v416_v63  ;;  %v665_v12 = vadd.f32 %v1372_v10, %v424_v0  ;;  %v606_v13 = vpop.f32.mrb[7].mxu0  ;;  %v638_v14 = vpop.f32.mrb[7].mxu1  ;;  %v687_v19 = vld [vmem:[#allocation2] sm:$0xff] (!%p1239_p6)  ;;  %v689_v37 = vld [vmem:[#allocation2 + $0x10] sm:$0xff] (!%p1239_p6)  ;;  %v1936_v41 = vadd.f32 (!%p1239_p6), %v1287_v34, %v697_v36  ;;  %1414 = vmatpush3.bf16.msra.mxu0 (!%p1239_p6), %v1411_v51 }
 0x14a   : > { %671 = vst.msk [vmem:[#allocation2 + $0x20] sm:$0xff] %vm666_vm1, %v654_v7  ;;  %679 = vst.msk [vmem:[#allocation2 + $0x60] sm:$0xff] %vm666_vm1, %v662_v8  ;;  %v655_v15 = vadd.f32 %v606_v13, %v414_v5  ;;  %v663_v16 = vadd.f32 %v638_v14, %v422_v6  ;;  %v695_v26 = vld [vmem:[#allocation2 + $0x40] sm:$0xff] (!%p1239_p6)  ;;  %v1919_v30 = vadd.f32 (!%p1239_p6), %v1267_v22, %v687_v19  ;;  %v698_v43 = vld [vmem:[#allocation2 + $0x58] sm:$0xff] (!%p1239_p6)  ;;  %1435 = vmatpush3.bf16.msra.mxu1 (!%p1239_p6), %v1411_v51 }
 0x14b   : > { %674 = vst.msk [vmem:[#allocation2 + $0x38] sm:$0xff] %vm666_vm1, %v657_v11  ;;  %682 = vst.msk [vmem:[#allocation2 + $0x78] sm:$0xff] %vm666_vm1, %v665_v12  ;;  %v688_v17 = vld [vmem:[#allocation2 + $0x8] sm:$0xff] (!%p1239_p6)  ;;  %v1926_v33 = vadd.f32 (!%p1239_p6), %v1283_v27, %v695_v26  ;;  %v1938_v42 = vadd.f32 (!%p1239_p6), %v1271_v35, %v689_v37  ;;  %v690_v46 = vld [vmem:[#allocation2 + $0x18] sm:$0xff] (!%p1239_p6)  ;;  %v1950_v52 = vadd.f32 (!%p1239_p6), %v1288_v38, %v698_v43 }
 0x14c   : > { %672 = vst.msk [vmem:[#allocation2 + $0x28] sm:$0xff] %vm666_vm1, %v655_v15  ;;  %680 = vst.msk [vmem:[#allocation2 + $0x68] sm:$0xff] %vm666_vm1, %v663_v16  ;;  %v696_v24 = vld [vmem:[#allocation2 + $0x48] sm:$0xff] (!%p1239_p6)  ;;  %v1917_v29 = vadd.f32 (!%p1239_p6), %v1268_v21, %v688_v17  ;;  %753 = vperm.xlu0 (!%p1239_p6), %1544, %v1919_v30   ;;  %v1952_v53 = vadd.f32 (!%p1239_p6), %v1272_v44, %v690_v46  ;;  %v867_v63 = vld [vmem:[%s2108_s3 + $0x20] sm:$0x1] (!%p1239_p6) }
 0x14d   : > { %v1924_v32 = vadd.f32 %v1284_v25, %v696_v24  ;;  %v1303_v1 = vld [vmem:[%s1858_s21 + $0x38] sm:$0xff]   ;;  %1381 = vmatprep.subr.msk.mxu0 %vm923_vm2, %v867_v63  ;;  %1433 = vmatprep.subr.msk.mxu1 %vm923_vm2, %v867_v63 }
 0x14e   : > { %758 = vperm.xlu1 %1545, %v1917_v29   ;;  %v1299_v2 = vld [vmem:[%s1858_s21 + $0x18] sm:$0xff]   ;;  %1382 = vmatpush3.msk.msra.mxu0 %vm923_vm2, %v867_v63  ;;  %v1295_v5 = vunpack.c.l.bf16 %v1303_v1  ;;  %v1296_v11 = vunpack.c.h.bf16 %v1303_v1  ;;  %v1240_v1 = vld [vmem:[%s2109_s4] ss:$0 sm:$0xff] }
 0x14f   : > { %1436 = vmatpush3.msk.msra.mxu1 %vm923_vm2, %v867_v63  ;;  %v1279_v6 = vunpack.c.l.bf16 %v1299_v2  ;;  %v1280_v12 = vunpack.c.h.bf16 %v1299_v2 }
 0x150   : > { %793 = vperm.xlu0 %1544, %v1926_v33   ;;  %v701_v7 = vld [vmem:[#allocation2 + $0x70] sm:$0xff] }
 0x151   : > { %v699_v56 = vld [vmem:[#allocation2 + $0x60] sm:$0xff]  ;;  %v693_v8 = vld [vmem:[#allocation2 + $0x30] sm:$0xff]  ;;  %v1973_v9 = vadd.f32 %v1295_v5, %v701_v7 }
 0x152   : > { %798 = vperm.xlu1 %1545, %v1924_v32   ;;  %v691_v57 = vld [vmem:[#allocation2 + $0x20] sm:$0xff]  ;;  %v1956_v59 = vadd.f32 %v1291_v54, %v699_v56  ;;  %v1975_v10 = vadd.f32 %v1279_v6, %v693_v8  ;;  %v702_v13 = vld [vmem:[#allocation2 + $0x78] sm:$0xff] }
 0x153   : > { %v1958_v60 = vadd.f32 %v1275_v55, %v691_v57  ;;  %v700_v61 = vld [vmem:[#allocation2 + $0x68] sm:$0xff]  ;;  %v694_v14 = vld [vmem:[#allocation2 + $0x38] sm:$0xff]  ;;  %v1979_v15 = vadd.f32 %v1296_v11, %v702_v13 }
 0x154   : > { %763 = vperm.xlu0 %1544, %v1938_v42   ;;  %v692_v0 = vld [vmem:[#allocation2 + $0x28] sm:$0xff]  ;;  %v1967_v3 = vadd.f32 %v1292_v58, %v700_v61  ;;  %v1981_v16 = vadd.f32 %v1280_v12, %v694_v14 }
 0x155   : > { %v1969_v4 = vadd.f32 %v1276_v62, %v692_v0 }
 0x156   : > { %803 = vperm.xlu1 %1545, %v1936_v41  }
 0x158   : > { %768 = vperm.xlu0 %1544, %v1952_v53  }
 0x15a   : > { %808 = vperm.xlu1 %1545, %v1950_v52  }
 0x15c   : > { %773 = vperm.xlu0 %1544, %v1958_v60  }
 0x15e   : > { %813 = vperm.xlu1 %1545, %v1956_v59  }
 0x160   : > { %778 = vperm.xlu0 %1544, %v1969_v4  }
 0x162   : > { %818 = vperm.xlu1 %1545, %v1967_v3  }
 0x164   : > { %783 = vperm.xlu0 %1544, %v1975_v10  }
 0x166   : > { %823 = vperm.xlu1 %1545, %v1973_v9  }
 0x168   : > { %788 = vperm.xlu0 %1544, %v1981_v16  }
 0x16a   : > { %828 = vperm.xlu1 %1545, %v1979_v15  }
 0x1cb   : > { %v754_v18 = vpop.permute.xlu0 %753 }
 0x1cd   : > { %v759_v17 = vpop.permute.xlu1 %758 }
 0x1ce   : > { %1546 = vrcp.f32 %v759_v17 }
 0x1cf   : > { %1548 = vrcp.f32 %v754_v18  ;;  %v794_v20 = vpop.permute.xlu0 %793 }
 0x1d1   : > { %v799_v19 = vpop.permute.xlu1 %798 }
 0x1d2   : > { %1550 = vrcp.f32 %v799_v19 }
 0x1d3   : > { %1552 = vrcp.f32 %v794_v20  ;;  %v764_v22 = vpop.permute.xlu0 %763 }
 0x1d5   : > { %v804_v21 = vpop.permute.xlu1 %803 }
 0x1d6   : > { %1554 = vrcp.f32 %v804_v21 }
 0x1d7   : > { %1556 = vrcp.f32 %v764_v22  ;;  %v769_v26 = vpop.permute.xlu0 %768 }
 0x1d8   : > { %v1547_v23 = vpop.eup %1546 }
 0x1d9   : > { %v1549_v24 = vpop.eup %1548  ;;  %v809_v25 = vpop.permute.xlu1 %808  ;;  %v834_v27 = vmul.f32 %v1547_v23, %v1917_v29 }
 0x1da   : > { %1558 = vrcp.f32 %v809_v25  ;;  %v832_v28 = vmul.f32 %v1549_v24, %v1919_v30 }
 0x1db   : > { %1560 = vrcp.f32 %v769_v26  ;;  %v774_v36 = vpop.permute.xlu0 %773 }
 0x1dc   : > { %v1551_v31 = vpop.eup %1550  ;;  %1383 = vmatprep.mubr.msk.f32.mxu0 %vm666_vm1, %v832_v28 }
 0x1dd   : > { %v1553_v34 = vpop.eup %1552  ;;  %1384 = vmatmul.mubr.msk.f32.vlgmr.msra.gmra.mrb[0].mxu0 %vm666_vm1, %v834_v27  ;;  %v814_v35 = vpop.permute.xlu1 %813  ;;  %v850_v37 = vmul.f32 %v1551_v31, %v1924_v32 }
 0x1de   : > { %1562 = vrcp.f32 %v814_v35  ;;  %v848_v38 = vmul.f32 %v1553_v34, %v1926_v33 }
 0x1df   : > { %1564 = vrcp.f32 %v774_v36  ;;  %v779_v40 = vpop.permute.xlu0 %778 }
 0x1e0   : > { %v1555_v39 = vpop.eup %1554  ;;  %1395 = vmatprep.mubr.msk.f32.mxu1 %vm666_vm1, %v848_v38 }
 0x1e1   : > { %v1557_v29 = vpop.eup %1556  ;;  %1396 = vmatmul.mubr.msk.f32.vlgmr.msra.gmra.mrb[0].mxu1 %vm666_vm1, %v850_v37  ;;  %v819_v30 = vpop.permute.xlu1 %818  ;;  %v852_v43 = vmul.f32 %v1555_v39, %v1936_v41 }
 0x1e2   : > { %1566 = vrcp.f32 %v819_v30  ;;  %v836_v44 = vmul.f32 %v1557_v29, %v1938_v42 }
 0x1e3   : > { %1568 = vrcp.f32 %v779_v40  ;;  %1398 = vmatprep.mubr.msk.f32.mxu1 %vm666_vm1, %v852_v43  ;;  %v784_v46 = vpop.permute.xlu0 %783 }
 0x1e4   : > { %v1559_v32 = vpop.eup %1558  ;;  %1386 = vmatprep.mubr.msk.f32.mxu0 %vm666_vm1, %v836_v44 }
 0x1e5   : > { %v1561_v33 = vpop.eup %1560  ;;  %v824_v45 = vpop.permute.xlu1 %823  ;;  %v854_v47 = vmul.f32 %v1559_v32, %v1950_v52 }
 0x1e6   : > { %1570 = vrcp.f32 %v824_v45  ;;  %v838_v48 = vmul.f32 %v1561_v33, %v1952_v53 }
 0x1e7   : > { %1572 = vrcp.f32 %v784_v46  ;;  %1399 = vmatmul.mubr.msk.f32.gmra.mrb[2].mxu1 %vm666_vm1, %v854_v47  ;;  %v789_v50 = vpop.permute.xlu0 %788 }
 0x1e8   : > { %v1563_v41 = vpop.eup %1562  ;;  %1387 = vmatmul.mubr.msk.f32.gmra.mrb[2].mxu0 %vm666_vm1, %v838_v48 }
 0x1e9   : > { %v1565_v42 = vpop.eup %1564  ;;  %v829_v49 = vpop.permute.xlu1 %828  ;;  %v856_v51 = vmul.f32 %v1563_v41, %v1956_v59 }
 0x1ea   : > { %1574 = vrcp.f32 %v829_v49  ;;  %v840_v54 = vmul.f32 %v1565_v42, %v1958_v60 }
 0x1eb   : > { %1576 = vrcp.f32 %v789_v50  ;;  %1401 = vmatprep.mubr.msk.f32.mxu1 %vm666_vm1, %v856_v51 }
 0x1ec   : > { %v1567_v52 = vpop.eup %1566  ;;  %1389 = vmatprep.mubr.msk.f32.mxu0 %vm666_vm1, %v840_v54 }
 0x1ed   : > { %v1569_v53 = vpop.eup %1568  ;;  %v858_v55 = vmul.f32 %v1567_v52, %v1967_v3 }
 0x1ee   : > { %v842_v56 = vmul.f32 %v1569_v53, %v1969_v4 }
 0x1ef   : > { %1402 = vmatmul.mubr.msk.f32.gmra.mrb[4].mxu1 %vm666_vm1, %v858_v55 }
 0x1f0   : > { %v1571_v57 = vpop.eup %1570  ;;  %1390 = vmatmul.mubr.msk.f32.gmra.mrb[4].mxu0 %vm666_vm1, %v842_v56 }
 0x1f1   : > { %v1573_v58 = vpop.eup %1572  ;;  %v860_v59 = vmul.f32 %v1571_v57, %v1973_v9 }
 0x1f2   : > { %v844_v60 = vmul.f32 %v1573_v58, %v1975_v10 }
 0x1f3   : > { %1404 = vmatprep.mubr.msk.f32.mxu1 %vm666_vm1, %v860_v59 }
 0x1f4   : > { %v1575_v61 = vpop.eup %1574  ;;  %1392 = vmatprep.mubr.msk.f32.mxu0 %vm666_vm1, %v844_v60 }
 0x1f5   : > { %v1577_v62 = vpop.eup %1576  ;;  %v862_v63 = vmul.f32 %v1575_v61, %v1979_v15 }
 0x1f6   : > { %v846_v0 = vmul.f32 %v1577_v62, %v1981_v16 }
 0x1f7   : > { %1405 = vmatmul.mubr.msk.f32.gmra.mrb[6].mxu1 %vm666_vm1, %v862_v63 }
 0x1f8   : > { %1393 = vmatmul.mubr.msk.f32.gmra.mrb[6].mxu0 %vm666_vm1, %v846_v0 }
 0x2b0   : > { %v1385_v2 = vpop.f32.mrb[0].mxu0 }
 0x2b1   : > { %v999_v3 = vadd.f32 %v1385_v2, %v1240_v1  ;;  %v993_v4 = vpop.f32.mrb[1].mxu0 }
 0x2b2   : > { %v994_v5 = vadd.f32 %v1240_v1, %v993_v4 }
 0x2b3   : > { %1073 = vst [vmem:[%s1862_s9 + $0x8] sm:$0xff] %v999_v3 }
 0x2b4   : > { %1072 = vst [vmem:[%s1862_s9] sm:$0xff] %v994_v5  ;;  %v1397_v6 = vpop.f32.mrb[0].mxu1 }
 0x2b5   : > { %v1039_v7 = vadd.f32 %v1397_v6, %v1240_v1  ;;  %v1033_v8 = vpop.f32.mrb[1].mxu1 }
 0x2b6   : > { %v1034_v9 = vadd.f32 %v1240_v1, %v1033_v8 }
 0x2b7   : > { %1081 = vst [vmem:[%s1862_s9 + $0x48] sm:$0xff] %v1039_v7 }
 0x2b8   : > { %1080 = vst [vmem:[%s1862_s9 + $0x40] sm:$0xff] %v1034_v9 }
 0x2ba   : > { %v1400_v10 = vpop.f32.mrb[2].mxu1 }
 0x2bb   : > { %v1388_v11 = vpop.f32.mrb[2].mxu0  ;;  %v1049_v12 = vadd.f32 %v1400_v10, %v1240_v1  ;;  %v1043_v13 = vpop.f32.mrb[3].mxu1 }
 0x2bc   : > { %v1009_v14 = vadd.f32 %v1388_v11, %v1240_v1  ;;  %v1003_v15 = vpop.f32.mrb[3].mxu0  ;;  %v1044_v16 = vadd.f32 %v1240_v1, %v1043_v13 }
 0x2bd   : > { %1083 = vst [vmem:[%s1862_s9 + $0x58] sm:$0xff] %v1049_v12  ;;  %v1004_v17 = vadd.f32 %v1240_v1, %v1003_v15 }
 0x2be   : > { %1075 = vst [vmem:[%s1862_s9 + $0x18] sm:$0xff] %v1009_v14  ;;  %1082 = vst [vmem:[%s1862_s9 + $0x50] sm:$0xff] %v1044_v16 }
 0x2bf   : > { %1074 = vst [vmem:[%s1862_s9 + $0x10] sm:$0xff] %v1004_v17 }
 0x2c2   : > { %v1403_v18 = vpop.f32.mrb[4].mxu1 }
 0x2c3   : > { %v1391_v19 = vpop.f32.mrb[4].mxu0  ;;  %v1059_v20 = vadd.f32 %v1403_v18, %v1240_v1  ;;  %v1053_v21 = vpop.f32.mrb[5].mxu1 }
 0x2c4   : > { %v1019_v22 = vadd.f32 %v1391_v19, %v1240_v1  ;;  %v1013_v23 = vpop.f32.mrb[5].mxu0  ;;  %v1054_v24 = vadd.f32 %v1240_v1, %v1053_v21 }
 0x2c5   : > { %1085 = vst [vmem:[%s1862_s9 + $0x68] sm:$0xff] %v1059_v20  ;;  %v1014_v25 = vadd.f32 %v1240_v1, %v1013_v23 }
 0x2c6   : > { %1077 = vst [vmem:[%s1862_s9 + $0x28] sm:$0xff] %v1019_v22  ;;  %1084 = vst [vmem:[%s1862_s9 + $0x60] sm:$0xff] %v1054_v24 }
 0x2c7   : > { %1076 = vst [vmem:[%s1862_s9 + $0x20] sm:$0xff] %v1014_v25 }
 0x2ca   : > { %v1406_v26 = vpop.f32.mrb[6].mxu1 }
 0x2cb   : > { %v1394_v27 = vpop.f32.mrb[6].mxu0  ;;  %v1069_v28 = vadd.f32 %v1406_v26, %v1240_v1  ;;  %v1063_v31 = vpop.f32.mrb[7].mxu1 }
 0x2cc   : > { %v1029_v34 = vadd.f32 %v1394_v27, %v1240_v1  ;;  %v1023_v35 = vpop.f32.mrb[7].mxu0  ;;  %v1064_v36 = vadd.f32 %v1240_v1, %v1063_v31 }
 0x2cd   : > { %1087 = vst [vmem:[%s1862_s9 + $0x78] sm:$0xff] %v1069_v28  ;;  %v1024_v37 = vadd.f32 %v1240_v1, %v1023_v35 }
 0x2ce   : > { %1079 = vst [vmem:[%s1862_s9 + $0x38] sm:$0xff] %v1029_v34  ;;  %1086 = vst [vmem:[%s1862_s9 + $0x70] sm:$0xff] %v1064_v36 }
 0x2cf   : > { %1078 = vst [vmem:[%s1862_s9 + $0x30] sm:$0xff] %v1024_v37 }
 0x2d0 PF: > { %s1264_s21 = sshll.u32 %s1676_s24, 11  ;;  %s1102_s26 = sshll.u32 %s1862_s9, 4  ;;  %s2043_s26 = int_to_ptr.vmem [resolvable:$true] %s1102_s26 }
 0x2d1   : > { %s2040_s23 = scalar_lea.hbm %s2110_s5, %s1264_s21  ;;  %s2123_s30 = sand.u32 1, %s1656_s19  }
 0x2d2   : > { %s2047_s17 = scalar_lea.sflag [#allocation5], %s2123_s30  ;;  %s1578_s28 = scalar_lea.vmem %s2043_s26, 2048 }
 0x2d3   : > { %p1579_p8 = scmp.ne.s32.totalorder %s2043_s26, %s1578_s28  ;;  %s1692_s24 = smov [#allocation4]  }
 0x2d4   : > { %s1582_s29 = sshll.u32 %s1692_s24, 4  ;;  %s1583_s29 = int_to_ptr.vmem [resolvable:$false] %s1582_s29 }
 0x2d5   : > { %p1580_p9 = pnand %p1579_p8, %p1797_p7  ;;  %s1584_s8 = scalar_lea.vmem %s1583_s29, 4096 }
 0x2d6   : > { %p1585_p11 = scmp.lt.s32.totalorder %s2043_s26, %s1583_s29  ;;  %p1586_p13 = scmp.lt.s32.totalorder %s1584_s8, %s1578_s28 }
 0x2d7   : > { %p1581_p10 = pneg %p1580_p9 }
 0x2d8   : > { %p1587_p0 = por %p1586_p13, %p1585_p11 }
 0x2da   : > { %p1588_p1 = pnand %p1587_p0, %p1581_p10 }
 0x2dc   : > { %1591 = shalt.err (!%p1588_p1)
}
 0x2dd   : > { %s1592_s9 = scalar_lea.hbm %s2040_s23, 2048  ;;  %s1596_s10 = scalar_lea.hbm %s2110_s5, 4096 }
 0x2de   : > { %p1593_p2 = scmp.ne.s32.totalorder %s2040_s23, %s1592_s9  ;;  %p1597_p5 = scmp.lt.u32.totalorder %s2040_s23, %s2110_s5 }
 0x2df   : > { %p1598_p6 = scmp.lt.u32.totalorder %s1596_s10, %s1592_s9  ;;  %p1600_p9 = scmp.lt.u32.totalorder %s1592_s9, %s2040_s23 }
 0x2e0   : > { %p1594_p3 = pnand %p1593_p2, %p1797_p7 }
 0x2e1   : > { %p1599_p8 = por %p1598_p6, %p1597_p5 }
 0x2e2   : > { %p1595_p4 = pneg %p1594_p3 }
 0x2e3   : > { %p1601_p10 = por %p1600_p9, %p1599_p8 }
 0x2e5   : > { %p1602_p11 = pnand %p1601_p10, %p1595_p4 }
 0x2e7   : > { %1605 = shalt.err (!%p1602_p11)
}
 0x2e8   : > { %s1693_s6 = smov 128   ;;  %s1694_s0 = smov 8  }
 0x2e9   : > { %1437 = dma.vmem_to_hbm [thread:$0]  (%p1797_p7), %s2043_s26, 2048, %s2040_s23, %s2047_s17, %s1693_s6, %s1693_s6, %s1694_s0  }
 0x2ea PF: > { %p1443_p13 = scmp.ge.s32.totalorder %s1688_s27, 2  ;;  %s1117_s30 = sand.u32 1, %s1652_s18  }
 0x2eb   : > { %s1118_s28 = scalar_lea.sflag [#allocation5], %s1117_s30 }
 0x2ec   : > { %p1440_p0 = pnand %p1443_p13, %p1805_p12 }
 0x2ee   : > { %1647 = dma.done.wait (!%p1440_p0), %s1118_s28, 2048  }
 0x2ef   : > { %1649 = vsyncadd (!%p1440_p0), %s1118_s28, 4294965248  ;;  %s18_s27 = sadd.s32 1, %s1688_s27   ;;  %s2124_s24 = sld [smem:[#allocation7_spill]] }
 0x2f0   : > { %p15_p1 = scmp.ge.s32.totalorder %s18_s27, 6   ;;  %s2125_s11 = sld [smem:[#allocation8_spill]] }
 0x2f1   : > { %s2126_s26 = sld [smem:[#allocation9_spill]]  ;;  %s2127_s18 = smov %s1656_s19 }
 0x2f2   : > { %s2128_s19 = smov %s1660_s20  ;;  %s2129_s20 = smov %s1810_s15 }
 0x2f3   : > { %s2130_s21 = smov %s1668_s22  ;;  %s2131_s22 = smov %s1813_s16 }
 0x2f4   : > { %s2132_s23 = smov %s1680_s25  ;;  %17 = sbr.rel (!%p15_p1) target bundleno = 8 (0x8), region = 135 }
 0x2f6   : > { %s2133_s25 = smov %s2125_s11 }
 0x2fb   :  { %1123 = vsyncpa [#allocation5], 1 }
 0x2fc   :  { %1125 = vsyncpa [#allocation5 + $0x1], 1 }

</bundles_post_ra>
